<compile_context>
chip_gen: v7x
topology: tpu7x:2x2x1
jax: 0.10.0
libtpu: 0.0.40
codegen_flags: <defaults>
</compile_context>

<pallas_src>
import jax
import jax.numpy as jnp
from jax.experimental import pallas as pl
from jax.experimental.pallas import tpu as pltpu


def _round_up(x, m):
    return -(-x // m) * m


def generator_kernel(z_ref, c_ref,
                     w1z_ref, w1c_ref, b1_ref,
                     w2_ref, b2_ref,
                     w3_ref, b3_ref,
                     w4_ref, b4_ref,
                     out_ref):
    # fc1: MXU dot over the z columns (bf16 operands, f32 accumulation) plus a
    # rank-1 VPU update for the single condition column.  This replaces the
    # concat/pad/cast prologue of the previous version.
    h = jnp.dot(z_ref[...].astype(jnp.bfloat16), w1z_ref[...],
                preferred_element_type=jnp.float32)
    h = h + c_ref[...] * w1c_ref[...] + b1_ref[...]
    h = jnp.maximum(h, 0.0)
    # fc2 + relu
    h = jnp.dot(h.astype(jnp.bfloat16), w2_ref[...],
                preferred_element_type=jnp.float32)
    h = jnp.maximum(h + b2_ref[...], 0.0)
    # fc3 + relu
    h = jnp.dot(h.astype(jnp.bfloat16), w3_ref[...],
                preferred_element_type=jnp.float32)
    h = jnp.maximum(h + b3_ref[...], 0.0)
    # fc4 (no activation), lane-dense (padded-to-128) f32 store.
    h = jnp.dot(h.astype(jnp.bfloat16), w4_ref[...],
                preferred_element_type=jnp.float32)
    out_ref[...] = h + b4_ref[...]


def init_generator_params(key, z_dim, condition_dim, output_dim):
    """nn.Linear-style init (U[-1/sqrt(fan_in), +1/sqrt(fan_in)]).
    Logical f32 weights stored as (in, out) so the math is x @ W + b,
    matching PyTorch's x @ W_pt.T + b."""
    dims = [z_dim + condition_dim, 128, 256, 512, output_dim]
    params = {}
    for i in range(4):
        fan_in, fan_out = dims[i], dims[i + 1]
        key, kw, kb = jax.random.split(key, 3)
        bound = 1.0 / jnp.sqrt(float(fan_in))
        params[f"w{i+1}"] = jax.random.uniform(
            kw, (fan_in, fan_out), jnp.float32, -bound, bound)
        params[f"b{i+1}"] = jax.random.uniform(
            kb, (1, fan_out), jnp.float32, -bound, bound)
    return params


def prepare_params(params, z_dim):
    """Split fc1 into z / condition parts, pad fc4 to a 128-lane output and
    cast weights to bf16 (biases + condition row stay f32)."""
    prep = {}
    w1 = params["w1"]
    prep["w1_z"] = w1[:z_dim].astype(jnp.bfloat16)      # (z_dim, 128)
    prep["w1_c"] = w1[z_dim:].astype(jnp.float32)       # (cond_dim=1, 128)
    prep["b1"] = params["b1"].astype(jnp.float32)
    prep["w2"] = params["w2"].astype(jnp.bfloat16)
    prep["b2"] = params["b2"].astype(jnp.float32)
    prep["w3"] = params["w3"].astype(jnp.bfloat16)
    prep["b3"] = params["b3"].astype(jnp.float32)
    w4, b4 = params["w4"], params["b4"]
    out_dim = w4.shape[1]
    out_pad = _round_up(max(out_dim, 128), 128)
    prep["w4"] = jnp.pad(
        w4, ((0, 0), (0, out_pad - out_dim))).astype(jnp.bfloat16)
    prep["b4"] = jnp.pad(
        b4, ((0, 0), (0, out_pad - out_dim))).astype(jnp.float32)
    return prep, out_dim


def generator_forward(z, condition, prep, out_dim, *, max_tile=2048):
    batch, z_dim = z.shape
    cond_dim = condition.shape[1]
    assert condition.shape[0] == batch
    # Rank-1 in-kernel update relies on a single condition column (per spec).
    assert cond_dim == 1 and prep["w1_c"].shape[0] == 1

    out_pad = prep["w4"].shape[1]   # multiple of 128

    # Even batch tiling; force >=2 grid steps when there's enough work so the
    # parallel axis shards across both TensorCores on v7x.
    batch8 = _round_up(batch, 8)
    num_tiles = max(pl.cdiv(batch8, max_tile), 2 if batch8 >= 16 else 1)
    tb = _round_up(pl.cdiv(batch8, num_tiles), 8)
    num_tiles = pl.cdiv(batch8, tb)
    padded_batch = num_tiles * tb

    if padded_batch != batch:
        # Only emitted when batch doesn't tile evenly; padded rows compute
        # harmless relu(b) garbage and are sliced off below.
        z = jnp.pad(z, ((0, padded_batch - batch), (0, 0)))
        condition = jnp.pad(condition, ((0, padded_batch - batch), (0, 0)))
    z = z.astype(jnp.float32)
    condition = condition.astype(jnp.float32)

    def resident(arr):
        # Constant block index -> fetched once, stays resident in VMEM.
        return pl.BlockSpec(arr.shape, lambda i: (0, 0))

    out = pl.pallas_call(
        generator_kernel,
        out_shape=jax.ShapeDtypeStruct((padded_batch, out_pad), jnp.float32),
        grid=(num_tiles,),
        in_specs=[
            pl.BlockSpec((tb, z_dim), lambda i: (i, 0)),     # z: pipelined tiles
            pl.BlockSpec((tb, cond_dim), lambda i: (i, 0)),  # condition tiles
            resident(prep["w1_z"]), resident(prep["w1_c"]), resident(prep["b1"]),
            resident(prep["w2"]), resident(prep["b2"]),
            resident(prep["w3"]), resident(prep["b3"]),
            resident(prep["w4"]), resident(prep["b4"]),
        ],
        out_specs=pl.BlockSpec((tb, out_pad), lambda i: (i, 0)),
        compiler_params=pltpu.CompilerParams(
            dimension_semantics=("parallel",)),
    )(z, condition,
      prep["w1_z"], prep["w1_c"], prep["b1"],
      prep["w2"], prep["b2"],
      prep["w3"], prep["b3"],
      prep["w4"], prep["b4"])

    return out[:batch, :out_dim]


def generator_reference_f32(z, condition, params):
    """Pure-f32 reference == PyTorch forward semantics."""
    x = jnp.concatenate([z, condition], axis=1)
    x = jnp.maximum(x @ params["w1"] + params["b1"], 0.0)
    x = jnp.maximum(x @ params["w2"] + params["b2"], 0.0)
    x = jnp.maximum(x @ params["w3"] + params["b3"], 0.0)
    return x @ params["w4"] + params["b4"]


def generator_reference_bf16(z, condition, prep, out_dim):
    """Reference with the same bf16 casts / f32 accumulation as the kernel."""
    h = jnp.dot(z.astype(jnp.bfloat16), prep["w1_z"],
                preferred_element_type=jnp.float32)
    h = h + condition.astype(jnp.float32) * prep["w1_c"] + prep["b1"]
    h = jnp.maximum(h, 0.0)
    h = jnp.dot(h.astype(jnp.bfloat16), prep["w2"],
                preferred_element_type=jnp.float32) + prep["b2"]
    h = jnp.maximum(h, 0.0)
    h = jnp.dot(h.astype(jnp.bfloat16), prep["w3"],
                preferred_element_type=jnp.float32) + prep["b3"]
    h = jnp.maximum(h, 0.0)
    h = jnp.dot(h.astype(jnp.bfloat16), prep["w4"],
                preferred_element_type=jnp.float32) + prep["b4"]
    return h[:, :out_dim]


if __name__ == "__main__":
    # Small shapes consistent with the module: z_dim=100, condition_dim=1.
    z_dim = 100
    condition_dim = 1
    output_dim = 16  # stand-in for features_scaled.shape[1]

    key = jax.random.PRNGKey(0)
    kp, kz, kc = jax.random.split(key, 3)

    params = init_generator_params(kp, z_dim, condition_dim, output_dim)
    prep, out_dim = prepare_params(params, z_dim)

    # --- production-like tiny batch (single grid step, no padding path) ---
    batch = 8
    z = jax.random.normal(kz, (batch, z_dim), jnp.float32)
    condition = jax.random.normal(kc, (batch, condition_dim), jnp.float32)

    out = generator_forward(z, condition, prep, out_dim)
    out = jax.block_until_ready(out)
    assert out.shape == (batch, output_dim)

    # Same-precision-path check (bf16 weights/activations, f32 accumulation).
    ref_bf16 = generator_reference_bf16(z, condition, prep, out_dim)
    assert jnp.allclose(out, ref_bf16, atol=2e-2, rtol=2e-2)

    # Semantics check against the pure-f32 PyTorch-equivalent forward
    # (looser tolerance only because of the intentional bf16 cast).
    ref_f32 = generator_reference_f32(z, condition, params)
    assert jnp.allclose(out, ref_f32, atol=5e-2, rtol=5e-2)

    # --- multi-tile / padded-batch path (exercises the >=2-step v7x grid) ---
    batch2 = 50
    kz2, kc2 = jax.random.split(kz)
    z2 = jax.random.normal(kz2, (batch2, z_dim), jnp.float32)
    cond2 = jax.random.normal(kc2, (batch2, condition_dim), jnp.float32)

    out2 = generator_forward(z2, cond2, prep, out_dim)
    out2 = jax.block_until_ready(out2)
    assert out2.shape == (batch2, output_dim)
    ref2 = generator_reference_bf16(z2, cond2, prep, out_dim)
    assert jnp.allclose(out2, ref2, atol=2e-2, rtol=2e-2)

    print("KERNEL_OK")
</pallas_src>

<mosaic_0001>
module attributes {stable_mosaic.version = 11 : i64} {
  func.func @generator_kernel(%arg0: i32, %arg1: memref<8x100xf32, #tpu.memory_space<vmem>>, %arg2: memref<8x1xf32, #tpu.memory_space<vmem>>, %arg3: memref<100x128xbf16, #tpu.memory_space<vmem>>, %arg4: memref<1x128xf32, #tpu.memory_space<vmem>>, %arg5: memref<1x128xf32, #tpu.memory_space<vmem>>, %arg6: memref<128x256xbf16, #tpu.memory_space<vmem>>, %arg7: memref<1x256xf32, #tpu.memory_space<vmem>>, %arg8: memref<256x512xbf16, #tpu.memory_space<vmem>>, %arg9: memref<1x512xf32, #tpu.memory_space<vmem>>, %arg10: memref<512x128xbf16, #tpu.memory_space<vmem>>, %arg11: memref<1x128xf32, #tpu.memory_space<vmem>>, %arg12: memref<8x128xf32, #tpu.memory_space<vmem>>) attributes {dimension_semantics = [#tpu.dimension_semantics<parallel>], iteration_bounds = array<i64: 1>, scalar_prefetch = 0 : i64, scratch_operands = 0 : i64, tpu.core_type = #tpu.core_type<tc>, window_params = [{transform_indices = @transform_0, window_bounds = array<i64: 8, 100>}, {transform_indices = @transform_1, window_bounds = array<i64: 8, 1>}, {pipeline_mode = #tpu.pipeline_mode<synchronous>, transform_indices = @transform_2, window_bounds = array<i64: 100, 128>}, {pipeline_mode = #tpu.pipeline_mode<synchronous>, transform_indices = @transform_3, window_bounds = array<i64: 1, 128>}, {pipeline_mode = #tpu.pipeline_mode<synchronous>, transform_indices = @transform_4, window_bounds = array<i64: 1, 128>}, {pipeline_mode = #tpu.pipeline_mode<synchronous>, transform_indices = @transform_5, window_bounds = array<i64: 128, 256>}, {pipeline_mode = #tpu.pipeline_mode<synchronous>, transform_indices = @transform_6, window_bounds = array<i64: 1, 256>}, {pipeline_mode = #tpu.pipeline_mode<synchronous>, transform_indices = @transform_7, window_bounds = array<i64: 256, 512>}, {pipeline_mode = #tpu.pipeline_mode<synchronous>, transform_indices = @transform_8, window_bounds = array<i64: 1, 512>}, {pipeline_mode = #tpu.pipeline_mode<synchronous>, transform_indices = @transform_9, window_bounds = array<i64: 512, 128>}, {pipeline_mode = #tpu.pipeline_mode<synchronous>, transform_indices = @transform_10, window_bounds = array<i64: 1, 128>}, {transform_indices = @transform_11, window_bounds = array<i64: 8, 128>}]} {
    %c0 = arith.constant 0 : index
    %c0_0 = arith.constant 0 : index
    %0 = vector.load %arg1[%c0, %c0_0] : memref<8x100xf32, #tpu.memory_space<vmem>>, vector<8x100xf32>
    %1 = arith.truncf %0 : vector<8x100xf32> to vector<8x100xbf16>
    %c0_1 = arith.constant 0 : index
    %c0_2 = arith.constant 0 : index
    %2 = vector.load %arg3[%c0_1, %c0_2] : memref<100x128xbf16, #tpu.memory_space<vmem>>, vector<100x128xbf16>
    %cst = arith.constant dense<0.000000e+00> : vector<8x128xf32>
    %3 = tpu.matmul %1, %2, %cst {dimension_numbers = #tpu.dot_dimension_numbers<[1], [0], [0], [1], [0, 0, 1, 1], [], []>} : vector<8x100xbf16>, vector<100x128xbf16>, vector<8x128xf32> -> vector<8x128xf32>
    %c0_3 = arith.constant 0 : index
    %c0_4 = arith.constant 0 : index
    %4 = vector.load %arg2[%c0_3, %c0_4] : memref<8x1xf32, #tpu.memory_space<vmem>>, vector<8x1xf32>
    %c0_5 = arith.constant 0 : index
    %c0_6 = arith.constant 0 : index
    %5 = vector.load %arg4[%c0_5, %c0_6] : memref<1x128xf32, #tpu.memory_space<vmem>>, vector<1x128xf32>
    %6 = vector.broadcast %4 : vector<8x1xf32> to vector<8x128xf32>
    %7 = vector.broadcast %5 : vector<1x128xf32> to vector<8x128xf32>
    %8 = arith.mulf %6, %7 : vector<8x128xf32>
    %9 = arith.addf %3, %8 : vector<8x128xf32>
    %c0_7 = arith.constant 0 : index
    %c0_8 = arith.constant 0 : index
    %10 = vector.load %arg5[%c0_7, %c0_8] : memref<1x128xf32, #tpu.memory_space<vmem>>, vector<1x128xf32>
    %11 = vector.broadcast %10 : vector<1x128xf32> to vector<8x128xf32>
    %12 = arith.addf %9, %11 : vector<8x128xf32>
    %cst_9 = arith.constant 0.000000e+00 : f32
    %13 = vector.broadcast %cst_9 : f32 to vector<8x128xf32>
    %14 = arith.maximumf %12, %13 : vector<8x128xf32>
    %15 = arith.truncf %14 : vector<8x128xf32> to vector<8x128xbf16>
    %c0_10 = arith.constant 0 : index
    %c0_11 = arith.constant 0 : index
    %16 = vector.load %arg6[%c0_10, %c0_11] : memref<128x256xbf16, #tpu.memory_space<vmem>>, vector<128x256xbf16>
    %cst_12 = arith.constant dense<0.000000e+00> : vector<8x256xf32>
    %17 = tpu.matmul %15, %16, %cst_12 {dimension_numbers = #tpu.dot_dimension_numbers<[1], [0], [0], [1], [0, 0, 1, 1], [], []>} : vector<8x128xbf16>, vector<128x256xbf16>, vector<8x256xf32> -> vector<8x256xf32>
    %c0_13 = arith.constant 0 : index
    %c0_14 = arith.constant 0 : index
    %18 = vector.load %arg7[%c0_13, %c0_14] : memref<1x256xf32, #tpu.memory_space<vmem>>, vector<1x256xf32>
    %19 = vector.broadcast %18 : vector<1x256xf32> to vector<8x256xf32>
    %20 = arith.addf %17, %19 : vector<8x256xf32>
    %cst_15 = arith.constant 0.000000e+00 : f32
    %21 = vector.broadcast %cst_15 : f32 to vector<8x256xf32>
    %22 = arith.maximumf %20, %21 : vector<8x256xf32>
    %23 = arith.truncf %22 : vector<8x256xf32> to vector<8x256xbf16>
    %c0_16 = arith.constant 0 : index
    %c0_17 = arith.constant 0 : index
    %24 = vector.load %arg8[%c0_16, %c0_17] : memref<256x512xbf16, #tpu.memory_space<vmem>>, vector<256x512xbf16>
    %cst_18 = arith.constant dense<0.000000e+00> : vector<8x512xf32>
    %25 = tpu.matmul %23, %24, %cst_18 {dimension_numbers = #tpu.dot_dimension_numbers<[1], [0], [0], [1], [0, 0, 1, 1], [], []>} : vector<8x256xbf16>, vector<256x512xbf16>, vector<8x512xf32> -> vector<8x512xf32>
    %c0_19 = arith.constant 0 : index
    %c0_20 = arith.constant 0 : index
    %26 = vector.load %arg9[%c0_19, %c0_20] : memref<1x512xf32, #tpu.memory_space<vmem>>, vector<1x512xf32>
    %27 = vector.broadcast %26 : vector<1x512xf32> to vector<8x512xf32>
    %28 = arith.addf %25, %27 : vector<8x512xf32>
    %cst_21 = arith.constant 0.000000e+00 : f32
    %29 = vector.broadcast %cst_21 : f32 to vector<8x512xf32>
    %30 = arith.maximumf %28, %29 : vector<8x512xf32>
    %31 = arith.truncf %30 : vector<8x512xf32> to vector<8x512xbf16>
    %c0_22 = arith.constant 0 : index
    %c0_23 = arith.constant 0 : index
    %32 = vector.load %arg10[%c0_22, %c0_23] : memref<512x128xbf16, #tpu.memory_space<vmem>>, vector<512x128xbf16>
    %cst_24 = arith.constant dense<0.000000e+00> : vector<8x128xf32>
    %33 = tpu.matmul %31, %32, %cst_24 {dimension_numbers = #tpu.dot_dimension_numbers<[1], [0], [0], [1], [0, 0, 1, 1], [], []>} : vector<8x512xbf16>, vector<512x128xbf16>, vector<8x128xf32> -> vector<8x128xf32>
    %c0_25 = arith.constant 0 : index
    %c0_26 = arith.constant 0 : index
    %34 = vector.load %arg11[%c0_25, %c0_26] : memref<1x128xf32, #tpu.memory_space<vmem>>, vector<1x128xf32>
    %35 = vector.broadcast %34 : vector<1x128xf32> to vector<8x128xf32>
    %36 = arith.addf %33, %35 : vector<8x128xf32>
    %c0_27 = arith.constant 0 : index
    %c0_28 = arith.constant 0 : index
    %37 = vector.load %arg12[%c0_27, %c0_28] : memref<8x128xf32, #tpu.memory_space<vmem>>, vector<8x128xf32>
    tpu.vector_store %arg12[%c0_27, %c0_28], %36 {strides = array<i32>} : memref<8x128xf32, #tpu.memory_space<vmem>>, vector<8x128xf32>,
    return
  }
  func.func @transform_0(%arg0: i32) -> (i32, i32) {
    %c0_i32 = arith.constant 0 : i32
    %c0_i32_0 = arith.constant 0 : i32
    return %arg0, %c0_i32 : i32, i32
  }
  func.func @transform_1(%arg0: i32) -> (i32, i32) {
    %c0_i32 = arith.constant 0 : i32
    %c0_i32_0 = arith.constant 0 : i32
    return %arg0, %c0_i32 : i32, i32
  }
  func.func @transform_2(%arg0: i32) -> (i32, i32) {
    %c0_i32 = arith.constant 0 : i32
    %c0_i32_0 = arith.constant 0 : i32
    %c0_i32_1 = arith.constant 0 : i32
    return %c0_i32, %c0_i32_0 : i32, i32
  }
  func.func @transform_3(%arg0: i32) -> (i32, i32) {
    %c0_i32 = arith.constant 0 : i32
    %c0_i32_0 = arith.constant 0 : i32
    %c0_i32_1 = arith.constant 0 : i32
    return %c0_i32, %c0_i32_0 : i32, i32
  }
  func.func @transform_4(%arg0: i32) -> (i32, i32) {
    %c0_i32 = arith.constant 0 : i32
    %c0_i32_0 = arith.constant 0 : i32
    %c0_i32_1 = arith.constant 0 : i32
    return %c0_i32, %c0_i32_0 : i32, i32
  }
  func.func @transform_5(%arg0: i32) -> (i32, i32) {
    %c0_i32 = arith.constant 0 : i32
    %c0_i32_0 = arith.constant 0 : i32
    %c0_i32_1 = arith.constant 0 : i32
    return %c0_i32, %c0_i32_0 : i32, i32
  }
  func.func @transform_6(%arg0: i32) -> (i32, i32) {
    %c0_i32 = arith.constant 0 : i32
    %c0_i32_0 = arith.constant 0 : i32
    %c0_i32_1 = arith.constant 0 : i32
    return %c0_i32, %c0_i32_0 : i32, i32
  }
  func.func @transform_7(%arg0: i32) -> (i32, i32) {
    %c0_i32 = arith.constant 0 : i32
    %c0_i32_0 = arith.constant 0 : i32
    %c0_i32_1 = arith.constant 0 : i32
    return %c0_i32, %c0_i32_0 : i32, i32
  }
  func.func @transform_8(%arg0: i32) -> (i32, i32) {
    %c0_i32 = arith.constant 0 : i32
    %c0_i32_0 = arith.constant 0 : i32
    %c0_i32_1 = arith.constant 0 : i32
    return %c0_i32, %c0_i32_0 : i32, i32
  }
  func.func @transform_9(%arg0: i32) -> (i32, i32) {
    %c0_i32 = arith.constant 0 : i32
    %c0_i32_0 = arith.constant 0 : i32
    %c0_i32_1 = arith.constant 0 : i32
    return %c0_i32, %c0_i32_0 : i32, i32
  }
  func.func @transform_10(%arg0: i32) -> (i32, i32) {
    %c0_i32 = arith.constant 0 : i32
    %c0_i32_0 = arith.constant 0 : i32
    %c0_i32_1 = arith.constant 0 : i32
    return %c0_i32, %c0_i32_0 : i32, i32
  }
  func.func @transform_11(%arg0: i32) -> (i32, i32) {
    %c0_i32 = arith.constant 0 : i32
    %c0_i32_0 = arith.constant 0 : i32
    return %arg0, %c0_i32 : i32, i32
  }
}

</mosaic_0001>

<bundles_post_ra>
// kernel: tpu_custom_call.1
= control target key start
LH: loop header
LB: loop body
LE: loop exit
PB: predicated region body
PF: predicated region fallthrough
CT: control target
= control target key end

     0   :  { %16 = vsyncpa [#allocation3], 0  ;;  %s1891_s0 = inlined_call_operand.vmem [shape: f32[8,100], index: 0, kind: input, shape index: {}]   ;;  %s1892_s1 = inlined_call_operand.vmem [shape: f32[8,1], index: 1, kind: input, shape index: {}]   ;;  %s1893_s2 = inlined_call_operand.hbm [shape: bf16[100,128], index: 2, kind: input, shape index: {}]   ;;  %s1894_s3 = inlined_call_operand.vmem [shape: f32[1,128], index: 3, kind: input, shape index: {}]   ;;  %s1895_s4 = inlined_call_operand.vmem [shape: f32[1,128], index: 4, kind: input, shape index: {}]   ;;  %s1896_s5 = inlined_call_operand.hbm [shape: bf16[128,256], index: 5, kind: input, shape index: {}]   ;;  %s1897_s6 = inlined_call_operand.vmem [shape: f32[1,256], index: 6, kind: input, shape index: {}]   ;;  %s1898_s7 = inlined_call_operand.hbm [shape: bf16[256,512], index: 7, kind: input, shape index: {}]   ;;  %s1899_s8 = inlined_call_operand.vmem [shape: f32[1,512], index: 8, kind: input, shape index: {}]   ;;  %s1900_s9 = inlined_call_operand.hbm [shape: bf16[512,128], index: 9, kind: input, shape index: {}]   ;;  %s1901_s10 = inlined_call_operand.vmem [shape: f32[1,128], index: 10, kind: input, shape index: {}]   ;;  %s1902_s11 = inlined_call_operand.hbm [shape: f32[8,128], index: 11, kind: output, shape index: {}]  }
   0x1   :  { %17 = vsyncpa [#allocation6], 0 }
   0x2   :  { %18 = vsyncpa [#allocation9], 0 }
   0x3   :  { %19 = vsyncpa [#allocation4], 0  ;;  %s1716_s17 = smov [#allocation5]   ;;  %s1598_s21 = scalar_lea.hbm %s1896_s5, 2048 }
   0x4   :  { %s45_s18 = sshll.u32 %s1716_s17, 4  ;;  %p1599_p0 = scmp.ne.s32.totalorder %s1896_s5, %s1598_s21  ;;  %s46_s18 = int_to_ptr.vmem [resolvable:$true] %s45_s18 }
   0x5   :  { %p1602_p1 = scmp.lt.u32.totalorder %s1598_s21, %s1896_s5 }
   0x7   :  { %p1604_p2 = pnand %p1602_p1, %p1599_p0 }
   0x9   :  { %1607 = shalt.err (!%p1604_p2)
}
   0xa   :  { %s1608_s26 = scalar_lea.vmem %s46_s18, 2048  ;;  %p1613_p4 = scmp.lt.s32.totalorder %s46_s18, %s46_s18 }
   0xb   :  { %p1609_p3 = scmp.ne.s32.totalorder %s46_s18, %s1608_s26  ;;  %p1614_p5 = scmp.lt.s32.totalorder %s1608_s26, %s1608_s26 }
   0xd   :  { %p1615_p6 = por %p1614_p5, %p1613_p4 }
   0xf   :  { %p1616_p7 = pnand %p1615_p6, %p1609_p3 }
  0x11   :  { %1619 = shalt.err (!%p1616_p7)
}
  0x12   :  { %s1717_s27 = smov 128   ;;  %s1718_s28 = smov 8  }
  0x13   :  { %51 = dma.hbm_to_vmem [thread:$0]  %s1896_s5, 2048, %s46_s18, [#allocation6], %s1717_s27, %s1717_s27, %s1718_s28  }
  0x14   :  { %s1719_s12 = smov [#allocation2]   ;;  %s1620_s16 = scalar_lea.hbm %s1893_s2, 832 }
  0x15   :  { %s29_s13 = sshll.u32 %s1719_s12, 4  ;;  %p1621_p8 = scmp.ne.s32.totalorder %s1893_s2, %s1620_s16  ;;  %s30_s13 = int_to_ptr.vmem [resolvable:$true] %s29_s13 }
  0x16   :  { %p1624_p9 = scmp.lt.u32.totalorder %s1620_s16, %s1893_s2 }
  0x18   :  { %p1626_p10 = pnand %p1624_p9, %p1621_p8 }
  0x1a   :  { %1629 = shalt.err (!%p1626_p10)
}
  0x1b   :  { %s1630_s22 = scalar_lea.vmem %s30_s13, 832  ;;  %p1635_p12 = scmp.lt.s32.totalorder %s30_s13, %s30_s13 }
  0x1c   :  { %p1631_p11 = scmp.ne.s32.totalorder %s30_s13, %s1630_s22  ;;  %p1636_p13 = scmp.lt.s32.totalorder %s1630_s22, %s1630_s22 }
  0x1e   :  { %p1637_p0 = por %p1636_p13, %p1635_p12 }
  0x20   :  { %p1638_p1 = pnand %p1637_p0, %p1631_p11 }
  0x22   :  { %1641 = shalt.err (!%p1638_p1)
}
  0x23   :  { %s1720_s5 = smov 64   ;;  %s1721_s18 = smov 4  }
  0x24   :  { %35 = dma.hbm_to_vmem [thread:$0]  %s1893_s2, 832, %s30_s13, [#allocation3], %s1720_s5, %s1720_s5, %s1721_s18  }
  0x25   :  { %s1722_s25 = smov [#allocation7]   ;;  %s1642_s29 = scalar_lea.hbm %s1898_s7, 8192 }
  0x26   :  { %s59_s26 = sshll.u32 %s1722_s25, 4  ;;  %p1643_p2 = scmp.ne.s32.totalorder %s1898_s7, %s1642_s29  ;;  %s60_s26 = int_to_ptr.vmem [resolvable:$true] %s59_s26 }
  0x27   :  { %p1646_p3 = scmp.lt.u32.totalorder %s1642_s29, %s1898_s7 }
  0x29   :  { %p1648_p4 = pnand %p1646_p3, %p1643_p2 }
  0x2b   :  { %1651 = shalt.err (!%p1648_p4)
}
  0x2c   :  { %s1652_s16 = scalar_lea.vmem %s60_s26, 8192  ;;  %p1657_p6 = scmp.lt.s32.totalorder %s60_s26, %s60_s26 }
  0x2d   :  { %p1653_p5 = scmp.ne.s32.totalorder %s60_s26, %s1652_s16  ;;  %p1658_p7 = scmp.lt.s32.totalorder %s1652_s16, %s1652_s16 }
  0x2f   :  { %p1659_p8 = por %p1658_p7, %p1657_p6 }
  0x31   :  { %p1660_p9 = pnand %p1659_p8, %p1653_p5 }
  0x33   :  { %1663 = shalt.err (!%p1660_p9)
}
  0x34   :  { %s1723_s2 = smov 256   ;;  %s1724_s13 = smov 16  }
  0x35   :  { %65 = dma.hbm_to_vmem [thread:$0]  %s1898_s7, 8192, %s60_s26, [#allocation6], %s1723_s2, %s1723_s2, %s1724_s13  }
  0x36   :  { %s1725_s20 = smov [#allocation8]   ;;  %s1664_s24 = scalar_lea.hbm %s1900_s9, 4096 }
  0x37   :  { %s73_s21 = sshll.u32 %s1725_s20, 4  ;;  %p1665_p10 = scmp.ne.s32.totalorder %s1900_s9, %s1664_s24  ;;  %s74_s21 = int_to_ptr.vmem [resolvable:$true] %s73_s21 }
  0x38   :  { %p1668_p11 = scmp.lt.u32.totalorder %s1664_s24, %s1900_s9 }
  0x3a   :  { %p1670_p12 = pnand %p1668_p11, %p1665_p10 }
  0x3c   :  { %1673 = shalt.err (!%p1670_p12)
}
  0x3d   :  { %s1674_s30 = scalar_lea.vmem %s74_s21, 4096  ;;  %p1679_p0 = scmp.lt.s32.totalorder %s74_s21, %s74_s21 }
  0x3e   :  { %p1675_p13 = scmp.ne.s32.totalorder %s74_s21, %s1674_s30  ;;  %p1680_p1 = scmp.lt.s32.totalorder %s1674_s30, %s1674_s30 }
  0x40   :  { %p1681_p2 = por %p1680_p1, %p1679_p0 }
  0x42   :  { %p1682_p3 = pnand %p1681_p2, %p1675_p13 }
  0x44   :  { %1685 = shalt.err (!%p1682_p3)
}
  0x45   :  { %79 = dma.hbm_to_vmem [thread:$0]  %s1900_s9, 4096, %s74_s21, [#allocation9], %s1720_s5, %s1720_s5, %s1721_s18  }
  0x46   :  { %1708 = dma.done.wait [#allocation3], 832  }
  0x47   :  { %1709 = vsyncadd [#allocation3], 4294966464 }
  0x48   :  { %1710 = dma.done.wait [#allocation6], 10240  }
  0x49   :  { %1711 = vsyncadd [#allocation6], 4294957056 }
  0x4a   :  { %1712 = dma.done.wait [#allocation9], 4096  }
  0x4b   :  { %1713 = vsyncadd [#allocation9], 4294963200  ;;  %v1726_v0 = vmov 0.0   ;;  %vm1727_vm0 = vmmov 0   ;;  %v1728_v1 = vmov 0   ;;  %v1439_v2 = vld [vmem:[#allocation2] sm:$0xff]  }
  0x4c   :  { %1406 = vmatprep.subr.bf16.mxu0 %v1726_v0  ;;  %1420 = vmatprep.mubr.msk.bf16.mxu0 %vm1727_vm0, %v1726_v0  ;;  %v1440_v3 = vld [vmem:[#allocation2 + $0x8] sm:$0xff]   ;;  %v1441_v4 = vld [vmem:[#allocation2 + $0x10] sm:$0xff]   ;;  %v110_v5 = vld [vmem:[%s1892_s1] sm:$0xff]  ;;  %vm167_vm1 = vcmask 1041408   ;;  %vm163_vm2 = vcmask 818176   ;;  %s1729_s13 = smov [#allocation10]  }
  0x4d   :  { %1438 = vset.pattern.permute.xlu0 %v1728_v1  ;;  %361 = vmatprep.mubr.bf16.mxu1 %v1728_v1  ;;  %v1446_v6 = vld [vmem:[#allocation5 + $0x4] ss:$8 sps:$4 sm:$0xff]   ;;  %v1448_v7 = vld [vmem:[#allocation5] ss:$8 sps:$4 sm:$0xff]   ;;  %v1449_v8 = vld [vmem:[#allocation5 + $0x14] ss:$8 sps:$4 sm:$0xff]  }
  0x4e   :  { %1407 = vmatpush3.bf16.msra.mxu0 %v1439_v2  ;;  %114 = vperm.xlu0 %1438, %v110_v5   ;;  %v1442_v9 = vld [vmem:[#allocation2 + $0x18] sm:$0xff]   ;;  %v1451_v10 = vld [vmem:[#allocation5 + $0x10] ss:$8 sps:$4 sm:$0xff]   ;;  %v1455_v14 = vld [vmem:[#allocation5 + $0x34] ss:$8 sps:$4 sm:$0xff]   ;;  %s1220_s17 = sshll.u32 %s1729_s13, 4  ;;  %s1221_s17 = int_to_ptr.vmem [resolvable:$true] %s1220_s17 }
  0x4f   :  { %1408 = vmatprep.subr.bf16.mxu0 %v1726_v0  ;;  %329 = vmatprep.subr.bf16.mxu1 %v1446_v6  ;;  %v1452_v11 = vld [vmem:[#allocation5 + $0x24] ss:$8 sps:$4 sm:$0xff]   ;;  %v1454_v13 = vld [vmem:[#allocation5 + $0x20] ss:$8 sps:$4 sm:$0xff]   ;;  %v1444_v15 = vld [vmem:[#allocation2 + $0x28] sm:$0xff]   ;;  %s1686_s19 = scalar_lea.vmem %s1221_s17, 128  ;;  %p1691_p5 = scmp.lt.s32.totalorder %s1221_s17, %s1221_s17 }
  0x50   :  { %330 = vmatpush1.bf16.msra.mxu1 %v1448_v7  ;;  %v1443_v12 = vld [vmem:[#allocation2 + $0x20] sm:$0xff]   ;;  %v1445_v16 = vld [vmem:[#allocation2 + $0x30] ss:$0 sps:$4 sm:$0x33]   ;;  %v1460_v20 = vld [vmem:[#allocation5 + $0x40] ss:$8 sps:$4 sm:$0xff]   ;;  %p1687_p4 = scmp.ne.s32.totalorder %s1221_s17, %s1686_s19  ;;  %p1692_p6 = scmp.lt.s32.totalorder %s1686_s19, %s1686_s19 }
  0x51   :  { %331 = vmatprep.subr.bf16.mxu1 %v1449_v8  ;;  %v1457_v17 = vld [vmem:[#allocation5 + $0x30] ss:$8 sps:$4 sm:$0xff]   ;;  %v1458_v18 = vld [vmem:[#allocation5 + $0x44] ss:$8 sps:$4 sm:$0xff]   ;;  %v1461_v21 = vld [vmem:[#allocation5 + $0x54] ss:$8 sps:$4 sm:$0xff]  }
  0x52   :  { %1409 = vmatpush3.bf16.msra.mxu0 %v1440_v3  ;;  %v95_v19 = vld [vmem:[%s1891_s0] sm:$0xff]  ;;  %v169_v22 = vsel %vm167_vm1, %v1445_v16, 0  ;;  %v1466_v26 = vld [vmem:[#allocation5 + $0x60] ss:$8 sps:$4 sm:$0xff]   ;;  %v1467_v27 = vld [vmem:[#allocation5 + $0x74] ss:$8 sps:$4 sm:$0xff]   ;;  %p1693_p7 = por %p1692_p6, %p1691_p5 }
  0x53   :  { %1410 = vmatprep.subr.bf16.mxu0 %v1726_v0  ;;  %v96_v23 = vpack.c.bf16 %v95_v19, %v95_v19  ;;  %v1463_v24 = vld [vmem:[#allocation5 + $0x50] ss:$8 sps:$4 sm:$0xff]   ;;  %v1464_v25 = vld [vmem:[#allocation5 + $0x64] ss:$8 sps:$4 sm:$0xff]  }
  0x54   :  { %332 = vmatpush1.bf16.msra.mxu1 %v1451_v10  ;;  %v1469_v28 = vld [vmem:[#allocation5 + $0x70] ss:$8 sps:$4 sm:$0xff]   ;;  %v1472_v30 = vld [vmem:[#allocation7 + $0x4] ss:$16 sps:$4 sm:$0xff]   ;;  %v1475_v31 = vld [vmem:[#allocation7 + $0xc] ss:$16 sps:$4 sm:$0xff]   ;;  %p1694_p8 = pnand %p1693_p7, %p1687_p4 }
  0x55   :  { %333 = vmatprep.subr.bf16.mxu1 %v1452_v11  ;;  %v1470_v29 = vld [vmem:[#allocation7] ss:$16 sps:$4 sm:$0xff]   ;;  %v1478_v32 = vld [vmem:[#allocation7 + $0x24] ss:$16 sps:$4 sm:$0xff]   ;;  %v1231_v58 = vld [vmem:[%s1894_s3] ss:$0 sm:$0xff] }
  0x56   :  { %1411 = vmatpush3.bf16.msra.mxu0 %v1441_v4  ;;  %v1476_v33 = vld [vmem:[#allocation7 + $0x20] ss:$16 sps:$4 sm:$0xff]   ;;  %v1484_v34 = vld [vmem:[#allocation7 + $0x44] ss:$16 sps:$4 sm:$0xff]   ;;  %v1240_v62 = vld [vmem:[%s1895_s4] ss:$0 sm:$0xff] }
  0x57   :  { %1412 = vmatprep.subr.bf16.mxu0 %v1726_v0  ;;  %v1482_v35 = vld [vmem:[#allocation7 + $0x40] ss:$16 sps:$4 sm:$0xff]   ;;  %v1490_v36 = vld [vmem:[#allocation7 + $0x64] ss:$16 sps:$4 sm:$0xff]   ;;  %v1473_v5 = vld [vmem:[#allocation7 + $0x8] ss:$16 sps:$4 sm:$0xff]  }
  0x58   :  { %334 = vmatpush1.bf16.msra.mxu1 %v1454_v13  ;;  %v1488_v37 = vld [vmem:[#allocation7 + $0x60] ss:$16 sps:$4 sm:$0xff]   ;;  %v1496_v38 = vld [vmem:[#allocation7 + $0x84] ss:$16 sps:$4 sm:$0xff]   ;;  %v1481_v7 = vld [vmem:[#allocation7 + $0x2c] ss:$16 sps:$4 sm:$0xff]  }
  0x59   :  { %335 = vmatprep.subr.bf16.mxu1 %v1455_v14  ;;  %v1494_v39 = vld [vmem:[#allocation7 + $0x80] ss:$16 sps:$4 sm:$0xff]   ;;  %v1502_v40 = vld [vmem:[#allocation7 + $0xa4] ss:$16 sps:$4 sm:$0xff]   ;;  %v1479_v8 = vld [vmem:[#allocation7 + $0x28] ss:$16 sps:$4 sm:$0xff]  }
  0x5a   :  { %1413 = vmatpush3.bf16.msra.mxu0 %v1442_v9  ;;  %v1500_v41 = vld [vmem:[#allocation7 + $0xa0] ss:$16 sps:$4 sm:$0xff]   ;;  %v1508_v42 = vld [vmem:[#allocation7 + $0xc4] ss:$16 sps:$4 sm:$0xff]   ;;  %v1487_v9 = vld [vmem:[#allocation7 + $0x4c] ss:$16 sps:$4 sm:$0xff]  }
  0x5b   :  { %1414 = vmatprep.subr.bf16.mxu0 %v1726_v0  ;;  %v1506_v43 = vld [vmem:[#allocation7 + $0xc0] ss:$16 sps:$4 sm:$0xff]   ;;  %v1514_v44 = vld [vmem:[#allocation7 + $0xe4] ss:$16 sps:$4 sm:$0xff]   ;;  %v1485_v10 = vld [vmem:[#allocation7 + $0x48] ss:$16 sps:$4 sm:$0xff]  }
  0x5c   :  { %336 = vmatpush1.bf16.msra.mxu1 %v1457_v17  ;;  %v1512_v45 = vld [vmem:[#allocation7 + $0xe0] ss:$16 sps:$4 sm:$0xff]   ;;  %v1520_v46 = vld [vmem:[#allocation7 + $0x104] ss:$16 sps:$4 sm:$0xff]   ;;  %v1493_v11 = vld [vmem:[#allocation7 + $0x6c] ss:$16 sps:$4 sm:$0xff]  }
  0x5d   :  { %337 = vmatprep.subr.bf16.mxu1 %v1458_v18  ;;  %v1518_v47 = vld [vmem:[#allocation7 + $0x100] ss:$16 sps:$4 sm:$0xff]   ;;  %v1526_v48 = vld [vmem:[#allocation7 + $0x124] ss:$16 sps:$4 sm:$0xff]   ;;  %v1499_v13 = vld [vmem:[#allocation7 + $0x8c] ss:$16 sps:$4 sm:$0xff]  }
  0x5e   :  { %1415 = vmatpush3.bf16.msra.mxu0 %v1443_v12  ;;  %v1524_v49 = vld [vmem:[#allocation7 + $0x120] ss:$16 sps:$4 sm:$0xff]   ;;  %v1532_v50 = vld [vmem:[#allocation7 + $0x144] ss:$16 sps:$4 sm:$0xff]   ;;  %v1491_v12 = vld [vmem:[#allocation7 + $0x68] ss:$16 sps:$4 sm:$0xff]  }
  0x5f   :  { %1416 = vmatprep.subr.bf16.mxu0 %v1726_v0  ;;  %v1530_v51 = vld [vmem:[#allocation7 + $0x140] ss:$16 sps:$4 sm:$0xff]   ;;  %v1538_v52 = vld [vmem:[#allocation7 + $0x164] ss:$16 sps:$4 sm:$0xff]   ;;  %v1497_v14 = vld [vmem:[#allocation7 + $0x88] ss:$16 sps:$4 sm:$0xff]  }
  0x60   :  { %338 = vmatpush1.bf16.msra.mxu1 %v1460_v20  ;;  %v1536_v53 = vld [vmem:[#allocation7 + $0x160] ss:$16 sps:$4 sm:$0xff]   ;;  %v1544_v54 = vld [vmem:[#allocation7 + $0x184] ss:$16 sps:$4 sm:$0xff]   ;;  %v1503_v16 = vld [vmem:[#allocation7 + $0xa8] ss:$16 sps:$4 sm:$0xff]  }
  0x61   :  { %339 = vmatprep.subr.bf16.mxu1 %v1461_v21  ;;  %v1542_v55 = vld [vmem:[#allocation7 + $0x180] ss:$16 sps:$4 sm:$0xff]   ;;  %v1550_v56 = vld [vmem:[#allocation7 + $0x1a4] ss:$16 sps:$4 sm:$0xff]   ;;  %v1511_v17 = vld [vmem:[#allocation7 + $0xcc] ss:$16 sps:$4 sm:$0xff]  }
  0x62   :  { %1417 = vmatpush3.bf16.msra.mxu0 %v1444_v15  ;;  %v1548_v57 = vld [vmem:[#allocation7 + $0x1a0] ss:$16 sps:$4 sm:$0xff]   ;;  %v1505_v15 = vld [vmem:[#allocation7 + $0xac] ss:$16 sps:$4 sm:$0xff]   ;;  %v1509_v18 = vld [vmem:[#allocation7 + $0xc8] ss:$16 sps:$4 sm:$0xff]  }
  0x63   :  { %1418 = vmatprep.subr.bf16.mxu0 %v1726_v0  ;;  %v1517_v19 = vld [vmem:[#allocation7 + $0xec] ss:$16 sps:$4 sm:$0xff]   ;;  %v1515_v20 = vld [vmem:[#allocation7 + $0xe8] ss:$16 sps:$4 sm:$0xff]  }
  0x64   :  { %340 = vmatpush1.bf16.msra.mxu1 %v1463_v24  ;;  %v1523_v21 = vld [vmem:[#allocation7 + $0x10c] ss:$16 sps:$4 sm:$0xff]   ;;  %v1527_v24 = vld [vmem:[#allocation7 + $0x128] ss:$16 sps:$4 sm:$0xff]  }
  0x65   :  { %341 = vmatprep.subr.bf16.mxu1 %v1464_v25  ;;  %v1535_v25 = vld [vmem:[#allocation7 + $0x14c] ss:$16 sps:$4 sm:$0xff]  }
  0x66   :  { %1419 = vmatpush3.bf16.msra.mxu0 %v169_v22  ;;  %v1521_v22 = vld [vmem:[#allocation7 + $0x108] ss:$16 sps:$4 sm:$0xff]  }
  0x67   :  { %780 = vmatprep.subr.bf16.mxu0 %v1472_v30  ;;  %v1545_v30 = vld [vmem:[#allocation7 + $0x188] ss:$16 sps:$4 sm:$0xff]  }
  0x68   :  { %342 = vmatpush1.bf16.msra.mxu1 %v1466_v26  ;;  %v1533_v26 = vld [vmem:[#allocation7 + $0x148] ss:$16 sps:$4 sm:$0xff]  }
  0x69   :  { %1421 = vmatmul.mubr.msk.bf16.vlgmr.msra.gmra.mrb[0].mxu0 %vm163_vm2, %v96_v23  ;;  %343 = vmatprep.subr.bf16.mxu1 %v1467_v27  ;;  %v1529_v23 = vld [vmem:[#allocation7 + $0x12c] ss:$16 sps:$4 sm:$0xff]  }
  0x6a   :  { %781 = vmatpush1.bf16.msra.mxu0 %v1470_v29  ;;  %v1541_v27 = vld [vmem:[#allocation7 + $0x16c] ss:$16 sps:$4 sm:$0xff]  }
  0x6b   :  { %782 = vmatprep.subr.bf16.mxu0 %v1478_v32  ;;  %v1547_v29 = vld [vmem:[#allocation7 + $0x18c] ss:$16 sps:$4 sm:$0xff]   ;;  %v1551_v32 = vld [vmem:[#allocation7 + $0x1a8] ss:$16 sps:$4 sm:$0xff]  }
  0x6c   :  { %344 = vmatpush1.bf16.msra.mxu1 %v1469_v28  ;;  %v1539_v28 = vld [vmem:[#allocation7 + $0x168] ss:$16 sps:$4 sm:$0xff]  }
  0x6d   :  { %821 = vmatprep.subr.bf16.mxu1 %v1475_v31  ;;  %v1553_v31 = vld [vmem:[#allocation7 + $0x1ac] ss:$16 sps:$4 sm:$0xff]  }
  0x6e   :  { %783 = vmatpush1.bf16.msra.mxu0 %v1476_v33  ;;  %v1556_v33 = vld [vmem:[#allocation7 + $0x1c4] ss:$16 sps:$4 sm:$0xff]  }
  0x6f   :  { %784 = vmatprep.subr.bf16.mxu0 %v1484_v34  ;;  %v1559_v34 = vld [vmem:[#allocation7 + $0x1cc] ss:$16 sps:$4 sm:$0xff]  }
  0x72   :  { %785 = vmatpush1.bf16.msra.mxu0 %v1482_v35  ;;  %v1554_v35 = vld [vmem:[#allocation7 + $0x1c0] ss:$16 sps:$4 sm:$0xff]  }
  0x73   :  { %786 = vmatprep.subr.bf16.mxu0 %v1490_v36  ;;  %v1557_v36 = vld [vmem:[#allocation7 + $0x1c8] ss:$16 sps:$4 sm:$0xff]  }
  0x76   :  { %787 = vmatpush1.bf16.msra.mxu0 %v1488_v37  ;;  %v1562_v37 = vld [vmem:[#allocation7 + $0x1e4] ss:$16 sps:$4 sm:$0xff]  }
  0x77   :  { %788 = vmatprep.subr.bf16.mxu0 %v1496_v38  ;;  %v1565_v38 = vld [vmem:[#allocation7 + $0x1ec] ss:$16 sps:$4 sm:$0xff]  }
  0x7a   :  { %789 = vmatpush1.bf16.msra.mxu0 %v1494_v39  ;;  %v1560_v39 = vld [vmem:[#allocation7 + $0x1e0] ss:$16 sps:$4 sm:$0xff]  }
  0x7b   :  { %790 = vmatprep.subr.bf16.mxu0 %v1502_v40  ;;  %v1563_v40 = vld [vmem:[#allocation7 + $0x1e8] ss:$16 sps:$4 sm:$0xff]  }
  0x7e   :  { %791 = vmatpush1.bf16.msra.mxu0 %v1500_v41  ;;  %v1566_v41 = vld [vmem:[#allocation8 + $0x40] sm:$0xff]  }
  0x7f   :  { %792 = vmatprep.subr.bf16.mxu0 %v1508_v42  ;;  %v1567_v42 = vld [vmem:[#allocation8 + $0xc0] sm:$0xff]  }
  0x82   :  { %793 = vmatpush1.bf16.msra.mxu0 %v1506_v43  ;;  %v239_v43 = vlaneseq }
  0x83   :  { %794 = vmatprep.subr.bf16.mxu0 %v1514_v44 }
  0x84   :  { %v1856_v44 = vshrl.u32 %v239_v43, 7 }
  0x86   :  { %795 = vmatpush1.bf16.msra.mxu0 %v1512_v45  ;;  %v241_v45 = vsub.s32 0, %v1856_v44 }
  0x87   :  { %796 = vmatprep.subr.bf16.mxu0 %v1520_v46  ;;  %v237_v46 = vld [vmem:[%s1897_s6] sm:$0x3] }
  0x8a   :  { %797 = vmatpush1.bf16.msra.mxu0 %v1518_v47  ;;  %v245_v47 = vsub.s32 1, %v1856_v44 }
  0x8b   :  { %798 = vmatprep.subr.bf16.mxu0 %v1526_v48  ;;  %v242_v48 = vrot.slane %v237_v46, %v241_v45 }
  0x8e   :  { %799 = vmatpush1.bf16.msra.mxu0 %v1524_v49  ;;  %v246_v49 = vrot.slane %v237_v46, %v245_v47 }
  0x8f   :  { %800 = vmatprep.subr.bf16.mxu0 %v1532_v50 }
  0x92   :  { %801 = vmatpush1.bf16.msra.mxu0 %v1530_v51 }
  0x93   :  { %802 = vmatprep.subr.bf16.mxu0 %v1538_v52 }
  0x96   :  { %803 = vmatpush1.bf16.msra.mxu0 %v1536_v53 }
  0x97   :  { %804 = vmatprep.subr.bf16.mxu0 %v1544_v54 }
  0x9a   :  { %805 = vmatpush1.bf16.msra.mxu0 %v1542_v55 }
  0x9b   :  { %806 = vmatprep.subr.bf16.mxu0 %v1550_v56 }
  0x9e   :  { %807 = vmatpush1.bf16.msra.mxu0 %v1548_v57 }
  0x9f   :  { %808 = vmatprep.subr.bf16.mxu0 %v1556_v33 }
  0xa2   :  { %809 = vmatpush1.bf16.msra.mxu0 %v1554_v35 }
  0xa3   :  { %810 = vmatprep.subr.bf16.mxu0 %v1562_v37 }
  0xa6   :  { %811 = vmatpush1.bf16.msra.mxu0 %v1560_v39 }
  0xa7   :  { %1362 = vmatprep.subr.bf16.mxu0 %v1566_v41 }
  0xcd   :  { %v115_v59 = vpop.permute.xlu0 %114 }
  0xce   :  { %v123_v60 = vmul.f32 %v1231_v58, %v115_v59  ;;  %v1568_v59 = vld [vmem:[#allocation8] sm:$0xff]  }
 0x13c   :  { %v205_v61 = vpop.f32.mrb[0].mxu0 }
 0x13d   :  { %v206_v63 = vadd.f32 %v205_v61, %v123_v60  ;;  %v1422_v0 = vpop.f32.mrb[1].mxu0  ;;  %v1569_v60 = vld [vmem:[#allocation8 + $0x80] sm:$0xff]  }
 0x13e   :  { %v208_v1 = vpop.f32.mrb[2].mxu0  ;;  %v1572_v0 = vld [vmem:[#allocation8 + $0x8] sm:$0xff]  }
 0x13f   :  { %v218_v2 = vadd.f32 %v1240_v62, %v206_v63  ;;  %v1423_v3 = vpop.f32.mrb[3].mxu0  ;;  %v1570_v62 = vld [vmem:[#allocation8 + $0x48] sm:$0xff]  }
 0x140   :  { %v1571_v63 = vld [vmem:[#allocation8 + $0xc8] sm:$0xff]   ;;  %v1575_v3 = vld [vmem:[#allocation8 + $0xd0] sm:$0xff]  }
 0x141   :  { %v219_v4 = vmax.f32 %v218_v2, 0.0  ;;  %v1573_v1 = vld [vmem:[#allocation8 + $0x88] sm:$0xff]   ;;  %v1574_v2 = vld [vmem:[#allocation8 + $0x50] sm:$0xff]  }
 0x143   :  { %v220_v6 = vpack.c.bf16 %v219_v4, %v219_v4  ;;  %v1576_v4 = vld [vmem:[#allocation8 + $0x10] sm:$0xff]  }
 0x145   :  { %362 = vmatmul.mubr.bf16.vlgmr.msra.gmra.mrb[0].mxu1 %v220_v6  ;;  %v1578_v6 = vld [vmem:[#allocation8 + $0x58] sm:$0xff]  }
 0x146   :  { %822 = vmatpush1.bf16.msra.mxu1 %v1473_v5  ;;  %v1577_v5 = vld [vmem:[#allocation8 + $0x90] sm:$0xff]  }
 0x147   :  { %823 = vmatprep.subr.bf16.mxu1 %v1481_v7  ;;  %v1579_v7 = vld [vmem:[#allocation8 + $0xd8] sm:$0xff]  }
 0x14a   :  { %824 = vmatpush1.bf16.msra.mxu1 %v1479_v8  ;;  %v1580_v8 = vld [vmem:[#allocation8 + $0x18] sm:$0xff]  }
 0x14b   :  { %825 = vmatprep.subr.bf16.mxu1 %v1487_v9  ;;  %v1581_v9 = vld [vmem:[#allocation8 + $0x98] sm:$0xff]  }
 0x14e   :  { %826 = vmatpush1.bf16.msra.mxu1 %v1485_v10  ;;  %v1582_v10 = vld [vmem:[#allocation8 + $0x60] sm:$0xff]  }
 0x14f   :  { %827 = vmatprep.subr.bf16.mxu1 %v1493_v11  ;;  %v1583_v11 = vld [vmem:[#allocation8 + $0xe0] sm:$0xff]  }
 0x152   :  { %828 = vmatpush1.bf16.msra.mxu1 %v1491_v12  ;;  %v1584_v12 = vld [vmem:[#allocation8 + $0x20] sm:$0xff]  }
 0x153   :  { %829 = vmatprep.subr.bf16.mxu1 %v1499_v13  ;;  %v1585_v13 = vld [vmem:[#allocation8 + $0xa0] sm:$0xff]  }
 0x156   :  { %830 = vmatpush1.bf16.msra.mxu1 %v1497_v14  ;;  %v1586_v14 = vld [vmem:[#allocation8 + $0x68] sm:$0xff]  }
 0x157   :  { %831 = vmatprep.subr.bf16.mxu1 %v1505_v15  ;;  %v1587_v15 = vld [vmem:[#allocation8 + $0xe8] sm:$0xff]  }
 0x15a   :  { %832 = vmatpush1.bf16.msra.mxu1 %v1503_v16  ;;  %v1588_v16 = vld [vmem:[#allocation8 + $0x28] sm:$0xff]  }
 0x15b   :  { %833 = vmatprep.subr.bf16.mxu1 %v1511_v17  ;;  %v1589_v17 = vld [vmem:[#allocation8 + $0xa8] sm:$0xff]  }
 0x15e   :  { %834 = vmatpush1.bf16.msra.mxu1 %v1509_v18  ;;  %v1590_v18 = vld [vmem:[#allocation8 + $0x70] sm:$0xff]  }
 0x15f   :  { %835 = vmatprep.subr.bf16.mxu1 %v1517_v19  ;;  %v1591_v19 = vld [vmem:[#allocation8 + $0xf0] sm:$0xff]  }
 0x162   :  { %836 = vmatpush1.bf16.msra.mxu1 %v1515_v20  ;;  %v1592_v20 = vld [vmem:[#allocation8 + $0x30] sm:$0xff]  }
 0x163   :  { %837 = vmatprep.subr.bf16.mxu1 %v1523_v21  ;;  %v1593_v21 = vld [vmem:[#allocation8 + $0xb0] sm:$0xff]  }
 0x166   :  { %838 = vmatpush1.bf16.msra.mxu1 %v1521_v22  ;;  %v1594_v22 = vld [vmem:[#allocation8 + $0x78] sm:$0xff]  }
 0x167   :  { %839 = vmatprep.subr.bf16.mxu1 %v1529_v23  ;;  %v1595_v23 = vld [vmem:[#allocation8 + $0xf8] sm:$0xff]  }
 0x16a   :  { %840 = vmatpush1.bf16.msra.mxu1 %v1527_v24  ;;  %v1596_v24 = vld [vmem:[#allocation8 + $0x38] sm:$0xff]  }
 0x16b   :  { %841 = vmatprep.subr.bf16.mxu1 %v1535_v25  ;;  %v1597_v25 = vld [vmem:[#allocation8 + $0xb8] sm:$0xff]  }
 0x16e   :  { %842 = vmatpush1.bf16.msra.mxu1 %v1533_v26  ;;  %v450_v26 = vsub.s32 2, %v1856_v44 }
 0x16f   :  { %843 = vmatprep.subr.bf16.mxu1 %v1541_v27  ;;  %v438_v27 = vld [vmem:[%s1899_s8] sm:$0xf] }
 0x172   :  { %844 = vmatpush1.bf16.msra.mxu1 %v1539_v28  ;;  %v454_v28 = vsub.s32 3, %v1856_v44 }
 0x173   :  { %845 = vmatprep.subr.bf16.mxu1 %v1547_v29  ;;  %v443_v29 = vrot.slane %v438_v27, %v241_v45 }
 0x176   :  { %846 = vmatpush1.bf16.msra.mxu1 %v1545_v30  ;;  %v451_v30 = vrot.slane %v438_v27, %v450_v26 }
 0x177   :  { %847 = vmatprep.subr.bf16.mxu1 %v1553_v31  ;;  %v447_v31 = vrot.slane %v438_v27, %v245_v47 }
 0x17a   :  { %848 = vmatpush1.bf16.msra.mxu1 %v1551_v32  ;;  %v455_v32 = vrot.slane %v438_v27, %v454_v28 }
 0x17b   :  { %849 = vmatprep.subr.bf16.mxu1 %v1559_v34 }
 0x17e   :  { %850 = vmatpush1.bf16.msra.mxu1 %v1557_v36 }
 0x17f   :  { %851 = vmatprep.subr.bf16.mxu1 %v1565_v38 }
 0x182   :  { %852 = vmatpush1.bf16.msra.mxu1 %v1563_v40 }
 0x183   :  { %1384 = vmatprep.subr.bf16.mxu1 %v1567_v42 }
 0x218   :  { %v363_v50 = vpop.f32.mrb[0].mxu1 }
 0x219   :  { %v364_v51 = vadd.f32 %v363_v50, %v242_v48  ;;  %v365_v52 = vpop.f32.mrb[1].mxu1 }
 0x21a   :  { %v366_v53 = vadd.f32 %v365_v52, %v246_v49  ;;  %v367_v54 = vpop.f32.mrb[2].mxu1 }
 0x21b   :  { %v370_v55 = vmax.f32 %v364_v51, 0.0  ;;  %v368_v56 = vpop.f32.mrb[3].mxu1 }
 0x21c   :  { %v371_v57 = vmax.f32 %v366_v53, 0.0 }
 0x21d   :  { %v372_v61 = vpack.c.bf16 %v370_v55, %v370_v55  ;;  %v1321_v55 = vld [vmem:[%s1901_s10] ss:$0 sm:$0xff] }
 0x21e   :  { %v373_v58 = vpack.c.bf16 %v371_v57, %v371_v57 }
 0x220   :  { %812 = vmatprep.mubr.bf16.mxu0 %v373_v58  ;;  %853 = vmatprep.mubr.bf16.mxu1 %v373_v58 }
 0x221   :  { %813 = vmatmul.mubr.bf16.vlgmr.msra.gmra.mrb[4].mxu0 %v372_v61  ;;  %854 = vmatmul.mubr.bf16.vlgmr.msra.gmra.mrb[4].mxu1 %v372_v61 }
 0x222   :  { %1363 = vmatpush3.bf16.msra.mxu0 %v1568_v59  ;;  %1385 = vmatpush3.bf16.msra.mxu1 %v1569_v60 }
 0x223   :  { %1364 = vmatprep.subr.bf16.mxu0 %v1570_v62  ;;  %1386 = vmatprep.subr.bf16.mxu1 %v1571_v63 }
 0x226   :  { %1365 = vmatpush3.bf16.msra.mxu0 %v1572_v0  ;;  %1387 = vmatpush3.bf16.msra.mxu1 %v1573_v1 }
 0x227   :  { %1366 = vmatprep.subr.bf16.mxu0 %v1574_v2  ;;  %1388 = vmatprep.subr.bf16.mxu1 %v1575_v3 }
 0x22a   :  { %1367 = vmatpush3.bf16.msra.mxu0 %v1576_v4  ;;  %1389 = vmatpush3.bf16.msra.mxu1 %v1577_v5 }
 0x22b   :  { %1368 = vmatprep.subr.bf16.mxu0 %v1578_v6  ;;  %1390 = vmatprep.subr.bf16.mxu1 %v1579_v7 }
 0x22e   :  { %1369 = vmatpush3.bf16.msra.mxu0 %v1580_v8  ;;  %1391 = vmatpush3.bf16.msra.mxu1 %v1581_v9 }
 0x22f   :  { %1370 = vmatprep.subr.bf16.mxu0 %v1582_v10  ;;  %1392 = vmatprep.subr.bf16.mxu1 %v1583_v11 }
 0x232   :  { %1371 = vmatpush3.bf16.msra.mxu0 %v1584_v12  ;;  %1393 = vmatpush3.bf16.msra.mxu1 %v1585_v13 }
 0x233   :  { %1372 = vmatprep.subr.bf16.mxu0 %v1586_v14  ;;  %1394 = vmatprep.subr.bf16.mxu1 %v1587_v15 }
 0x236   :  { %1373 = vmatpush3.bf16.msra.mxu0 %v1588_v16  ;;  %1395 = vmatpush3.bf16.msra.mxu1 %v1589_v17 }
 0x237   :  { %1374 = vmatprep.subr.bf16.mxu0 %v1590_v18  ;;  %1396 = vmatprep.subr.bf16.mxu1 %v1591_v19 }
 0x23a   :  { %1375 = vmatpush3.bf16.msra.mxu0 %v1592_v20  ;;  %1397 = vmatpush3.bf16.msra.mxu1 %v1593_v21 }
 0x23b   :  { %1376 = vmatprep.subr.bf16.mxu0 %v1594_v22  ;;  %1398 = vmatprep.subr.bf16.mxu1 %v1595_v23 }
 0x23e   :  { %1377 = vmatpush3.bf16.msra.mxu0 %v1596_v24  ;;  %1399 = vmatpush3.bf16.msra.mxu1 %v1597_v25 }
 0x2f4   :  { %v814_v33 = vpop.f32.mrb[4].mxu0  ;;  %v855_v34 = vpop.f32.mrb[4].mxu1 }
 0x2f5   :  { %v815_v35 = vadd.f32 %v814_v33, %v443_v29  ;;  %v856_v36 = vadd.f32 %v855_v34, %v451_v30  ;;  %v816_v37 = vpop.f32.mrb[5].mxu0  ;;  %v857_v38 = vpop.f32.mrb[5].mxu1 }
 0x2f6   :  { %v817_v39 = vadd.f32 %v816_v37, %v447_v31  ;;  %v858_v40 = vadd.f32 %v857_v38, %v455_v32  ;;  %v818_v41 = vpop.f32.mrb[6].mxu0  ;;  %v859_v42 = vpop.f32.mrb[6].mxu1 }
 0x2f7   :  { %v862_v43 = vmax.f32 %v815_v35, 0.0  ;;  %v864_v46 = vmax.f32 %v856_v36, 0.0  ;;  %v819_v48 = vpop.f32.mrb[7].mxu0  ;;  %v860_v49 = vpop.f32.mrb[7].mxu1 }
 0x2f8   :  { %v863_v45 = vmax.f32 %v817_v39, 0.0  ;;  %v865_v50 = vmax.f32 %v858_v40, 0.0 }
 0x2f9   :  { %v866_v47 = vpack.c.bf16 %v862_v43, %v862_v43  ;;  %v868_v52 = vpack.c.bf16 %v864_v46, %v864_v46 }
 0x2fa   :  { %v867_v51 = vpack.c.bf16 %v863_v45, %v863_v45  ;;  %v869_v44 = vpack.c.bf16 %v865_v50, %v865_v50 }
 0x2fc   :  { %1165 = vmatprep.mubr.bf16.mxu0 %v867_v51  ;;  %1205 = vmatprep.mubr.bf16.mxu1 %v869_v44 }
 0x2fd   :  { %1166 = vmatmul.mubr.bf16.vlgmr.msra.gmra.mrb[8].mxu0 %v866_v47  ;;  %1206 = vmatmul.mubr.bf16.vlgmr.msra.gmra.mrb[8].mxu1 %v868_v52 }
 0x3d0   :  { %v1378_v53 = vpop.f32.mrb[8].mxu0  ;;  %v1400_v54 = vpop.f32.mrb[8].mxu1 }
 0x3d1   :  { %v1379_v56 = vpop.f32.mrb[9].mxu0  ;;  %v1401_v57 = vpop.f32.mrb[9].mxu1 }
 0x3d2   :  { %v1380_v58 = vadd.f32 %v1379_v56, %v1378_v53  ;;  %v1402_v59 = vadd.f32 %v1401_v57, %v1400_v54  ;;  %v1381_v60 = vpop.f32.mrb[10].mxu0  ;;  %v1403_v61 = vpop.f32.mrb[10].mxu1 }
 0x3d3   :  { %v1382_v62 = vpop.f32.mrb[11].mxu0  ;;  %v1404_v63 = vpop.f32.mrb[11].mxu1 }
 0x3d4   :  { %v1168_v0 = vadd.f32 %v1380_v58, %v1321_v55 }
 0x3d6   :  { %v1208_v1 = vadd.f32 %v1402_v59, %v1168_v0 }
 0x3d8   :  { %1213 = vst [vmem:[#allocation10] sm:$0xff] %v1208_v1 }
 0x3d9   :  { %1697 = shalt.err (!%p1694_p8)
}
 0x3da   :  { %s1698_s21 = scalar_lea.hbm %s1902_s11, 128 }
 0x3db   :  { %p1699_p9 = scmp.ne.s32.totalorder %s1902_s11, %s1698_s21  ;;  %p1702_p10 = scmp.lt.u32.totalorder %s1698_s21, %s1902_s11 }
 0x3dd   :  { %p1704_p11 = pnand %p1702_p10, %p1699_p9 }
 0x3df   :  { %1707 = shalt.err (!%p1704_p11)
}
 0x3e0   :  { %1223 = dma.vmem_to_hbm [thread:$0]  %s1221_s17, 128, %s1902_s11, [#allocation4]  }
 0x3e1   :  { %1714 = dma.done.wait [#allocation4], 128  }
 0x3e2   :  { %1715 = vsyncadd [#allocation4], 4294967168 }
 0x3e3   :  { %1227 = vsyncpa [#allocation3], 1 }
 0x3e4   :  { %1228 = vsyncpa [#allocation6], 1 }
 0x3e5   :  { %1229 = vsyncpa [#allocation9], 1 }
 0x3e6   :  { %1230 = vsyncpa [#allocation4], 1 }

</bundles_post_ra>
